<compile_context>
chip_gen: v7x
topology: tpu7x:2x2x1
jax: 0.10.0
libtpu: 0.0.40
codegen_flags: <defaults>
</compile_context>

<pallas_src>
import jax
import jax.numpy as jnp
from jax.experimental import pallas as pl
from jax.experimental.pallas import tpu as pltpu


def _sigmoid_transform_kernel(z_ref, e_ref):
    """One (edge_tile, out_features) tile: e = sigmoid(z) via tanh identity."""
    z = z_ref[...].astype(jnp.float32)
    # sigmoid(z) = 0.5 * tanh(0.5 * z) + 0.5  -> one EUP tanh, two VPU ops.
    e_ref[...] = (0.5 * jnp.tanh(0.5 * z) + 0.5).astype(e_ref.dtype)


def _pick_edge_tile(num_edges, out_features, *, max_tile=1024,
                    vmem_budget_bytes=8 << 20):
    """Sublane-aligned row tile: VMEM-budgeted, and >=2 tiles when possible."""
    # Per grid step the pipeline holds a z block + an e block (f32), each
    # double-buffered: 2 arrays * 2 buffers * 4 bytes per element.
    bytes_per_row = max(out_features, 1) * 4 * 2 * 2
    cap = max(8, (vmem_budget_bytes // bytes_per_row) // 8 * 8)
    cap = min(cap, max_tile)
    # Aim for >= 2 grid tiles so the "parallel" axis can use both v7x cores.
    target = -(-num_edges // 2)          # ceil(num_edges / 2)
    target = -(-target // 8) * 8         # round up to a sublane multiple
    return min(cap, max(8, target))


def sample_edge_logit_normal_prior(key, num_edges, out_features, *,
                                   edge_tile=None, dtype=jnp.float32):
    """Draw e ~ LogitNormal(0, 1) of shape [num_edges, out_features]."""
    # Base distribution z ~ Normal(0, 1): portable jax.random PRNG (the TPU
    # hardware PRNG primitives do not lower on the interpret/CPU path).
    z = jax.random.normal(key, (num_edges, out_features), dtype=jnp.float32)

    if edge_tile is None:
        edge_tile = _pick_edge_tile(num_edges, out_features)
    assert edge_tile % 8 == 0, "edge_tile must be sublane (8) aligned"

    num_tiles = pl.cdiv(num_edges, edge_tile)

    out = pl.pallas_call(
        _sigmoid_transform_kernel,
        out_shape=jax.ShapeDtypeStruct((num_edges, out_features), dtype),
        grid_spec=pltpu.PrefetchScalarGridSpec(
            num_scalar_prefetch=0,
            grid=(num_tiles,),
            in_specs=[pl.BlockSpec((edge_tile, out_features),
                                   lambda i: (i, 0))],
            out_specs=pl.BlockSpec((edge_tile, out_features),
                                   lambda i: (i, 0)),
        ),
        compiler_params=pltpu.CompilerParams(
            dimension_semantics=("parallel",)),
    )(z)
    return out


def edge_logit_normal_prior_forward(src_ids, dst_ids, h, *, out_features,
                                    key, edge_tile=None):
    """Mirror of EdgeLogitNormalPrior.forward(g, h).

    The graph only contributes its number of edges; `h` only its dtype/device
    in the original module.
    """
    del dst_ids, h
    num_edges = src_ids.shape[0]
    return sample_edge_logit_normal_prior(key, num_edges, out_features,
                                          edge_tile=edge_tile,
                                          dtype=jnp.float32)


if __name__ == "__main__":
    key = jax.random.PRNGKey(0)
    k_src, k_dst, k_h, k_e, k_e2 = jax.random.split(key, 5)

    # Small deterministic problem consistent with the module's example
    # (graph + node features), lane-dense out_features, and an edge count
    # that is deliberately NOT a multiple of the row tile (ragged last tile).
    num_nodes = 16
    f_in = 32
    out_features = 128
    num_edges = 300

    src_ids = jax.random.randint(k_src, (num_edges,), 0, num_nodes,
                                 dtype=jnp.int32)
    dst_ids = jax.random.randint(k_dst, (num_edges,), 0, num_nodes,
                                 dtype=jnp.int32)
    h = jax.random.normal(k_h, (num_nodes, f_in), dtype=jnp.float32)

    e = edge_logit_normal_prior_forward(src_ids, dst_ids, h,
                                        out_features=out_features, key=k_e)
    e = jax.block_until_ready(e)

    # Shape / dtype of the prior sample.
    assert e.shape == (num_edges, out_features), e.shape
    assert e.dtype == jnp.float32

    # Support of the logit-normal distribution is strictly (0, 1).
    assert bool(jnp.all(e > 0.0)) and bool(jnp.all(e < 1.0)), \
        "values outside (0,1)"

    # Moments of sigmoid(N(0,1)): mean = 0.5, std ~= 0.2083.
    mean = float(jnp.mean(e))
    std = float(jnp.std(e))
    assert abs(mean - 0.5) < 0.01, f"bad mean {mean}"
    assert abs(std - 0.2083) < 0.02, f"bad std {std}"

    # Deterministic given the key; different keys give different samples.
    e_again = jax.block_until_ready(
        edge_logit_normal_prior_forward(src_ids, dst_ids, h,
                                        out_features=out_features, key=k_e))
    assert bool(jnp.array_equal(e, e_again)), "same key must reproduce"

    e_other = jax.block_until_ready(
        edge_logit_normal_prior_forward(src_ids, dst_ids, h,
                                        out_features=out_features, key=k_e2))
    assert not bool(jnp.allclose(e, e_other)), "different keys must differ"

    print("KERNEL_OK")
</pallas_src>

<mosaic_0001>
module attributes {stable_mosaic.version = 11 : i64} {
  func.func @_sigmoid_transform_kernel(%arg0: i32, %arg1: memref<152x128xf32, #tpu.memory_space<vmem>>, %arg2: memref<152x128xf32, #tpu.memory_space<vmem>>) attributes {dimension_semantics = [#tpu.dimension_semantics<parallel>], iteration_bounds = array<i64: 2>, scalar_prefetch = 0 : i64, scratch_operands = 0 : i64, tpu.core_type = #tpu.core_type<tc>, window_params = [{transform_indices = @transform_0, window_bounds = array<i64: 152, 128>}, {transform_indices = @transform_1, window_bounds = array<i64: 152, 128>}]} {
    %c0 = arith.constant 0 : index
    %c0_0 = arith.constant 0 : index
    %0 = vector.load %arg1[%c0, %c0_0] : memref<152x128xf32, #tpu.memory_space<vmem>>, vector<152x128xf32>
    %cst = arith.constant 5.000000e-01 : f32
    %1 = vector.broadcast %cst : f32 to vector<152x128xf32>
    %2 = arith.mulf %1, %0 : vector<152x128xf32>
    %3 = math.tanh %2 : vector<152x128xf32>
    %cst_1 = arith.constant 5.000000e-01 : f32
    %4 = vector.broadcast %cst_1 : f32 to vector<152x128xf32>
    %5 = arith.mulf %4, %3 : vector<152x128xf32>
    %cst_2 = arith.constant 5.000000e-01 : f32
    %6 = vector.broadcast %cst_2 : f32 to vector<152x128xf32>
    %7 = arith.addf %5, %6 : vector<152x128xf32>
    %c0_3 = arith.constant 0 : index
    %c0_4 = arith.constant 0 : index
    %8 = vector.load %arg2[%c0_3, %c0_4] : memref<152x128xf32, #tpu.memory_space<vmem>>, vector<152x128xf32>
    tpu.vector_store %arg2[%c0_3, %c0_4], %7 {strides = array<i32>} : memref<152x128xf32, #tpu.memory_space<vmem>>, vector<152x128xf32>,
    return
  }
  func.func @transform_0(%arg0: i32) -> (i32, i32) {
    %c0_i32 = arith.constant 0 : i32
    %c0_i32_0 = arith.constant 0 : i32
    return %arg0, %c0_i32 : i32, i32
  }
  func.func @transform_1(%arg0: i32) -> (i32, i32) {
    %c0_i32 = arith.constant 0 : i32
    %c0_i32_0 = arith.constant 0 : i32
    return %arg0, %c0_i32 : i32, i32
  }
}

</mosaic_0001>

<bundles_post_ra>
// kernel: tpu_custom_call.1
= control target key start
LH: loop header
LB: loop body
LE: loop exit
PB: predicated region body
PF: predicated region fallthrough
CT: control target
= control target key end

     0   :  { %6 = vsyncpa [#allocation3], 0  ;;  %s755_s0 = inlined_call_operand.hbm [shape: f32[300,128], index: 0, kind: input, shape index: {}]   ;;  %s756_s1 = inlined_call_operand.hbm [shape: f32[300,128], index: 1, kind: output, shape index: {}]  }
   0x1   :  { %8 = vsyncpa [#allocation3 + $0x1], 0 }
   0x2   :  { %9 = vsyncpa [#allocation4], 0 }
   0x3   :  { %11 = vsyncpa [#allocation4 + $0x1], 0  ;;  %s552_s6 = smov 0   ;;  %s554_s7 = smov 0  }
   0x4   :  { %s556_s8 = smov 0   ;;  %s558_s9 = smov 0  }
   0x5 LB: > { %s573_s10 = sadd.s32 4294967295, %s534_s9   ;;  %s338_s11 = sadd.s32 4294967294, %s534_s9   ;;  %s534_s9 = sphi %s558_s9, %s768_s9   ;;  %s530_s8 = sphi %s556_s8, %s767_s8   ;;  %s526_s7 = sphi %s554_s7, %s766_s7   ;;  %s522_s6 = sphi %s552_s6, %s765_s6  }
   0x6   : > { %s577_s12 = sadd.s32 1, %s534_s9   ;;  %s24_s13 = sadd.s32 1, %s530_s8 }
   0x7   : > { %s21_s14 = ssub.s32 %s534_s9, %s577_s12  ;;  %p31_p0 = scmp.ne.s32.totalorder %s530_s8, %s526_s7 }
   0x8   : > { %p22_p1 = scmp.eq.s32.totalorder %s21_s14, 0  ;;  %p32_p2 = scmp.eq.s32.totalorder %s534_s9, 0 }
   0x9   : > { %p37_p3 = scmp.ne.s32.totalorder %s526_s7, %s522_s6  ;;  %p38_p4 = scmp.eq.s32.totalorder %s573_s10, 0 }
   0xa   : > { %s589_s15 = scalar_select %p22_p1, %s530_s8, %s24_s13  }
   0xb   : > { %p33_p5 = por %p32_p2, %p31_p0  ;;  %p591_p6 = por %p38_p4, %p37_p3 }
   0xc   : > { %p61_p7 = scmp.eq.s32.totalorder %s573_s10, 1  ;;  %p67_p8 = scmp.eq.s32.totalorder %s338_s11, 1 }
   0xd   : > { %p362_p10 = scmp.lt.s32.totalorder %s534_s9, 2  ;;  %s87_s19 = sand.u32 1, %s530_s8  }
   0xe   : > { %p598_p11 = por %p61_p7, %p31_p0  ;;  %p602_p12 = por %p67_p8, %p37_p3 }
   0xf   : > { %s346_s20 = smul.u32 2432, %s534_s9  ;;  %p613_p13 = pnand %p362_p10, %p33_p5 }
  0x10   : > { %s759_s17 = scalar_select %p598_p11, 1, 0 }
  0x11   : > { %s760_s18 = scalar_select %p602_p12, 1, 0 }
  0x12   : > { %s348_s21 = smul.u32 152, %s87_s19  ;;  %s611_s24 = scalar_lea.hbm %s755_s0, %s346_s20 }
  0x13   : > { %s619_s28 = scalar_lea.sflag [#allocation3], %s87_s19  ;;  %s438_s29 = scalar_lea.hbm %s611_s24, 2432 }
  0x14   : > { %s91_s26 = scalar_lea.vmem [#allocation2], %s348_s21  ;;  %p439_p0 = scmp.ne.s32.totalorder %s611_s24, %s438_s29 }
  0x15   : > { %s98_s27 = sshll.u32 %s91_s26, 4  ;;  %p440_p1 = pneg %p613_p13  ;;  %s617_s27 = int_to_ptr.vmem [resolvable:$true] %s98_s27 }
  0x16   : > { %s443_s3 = scalar_lea.hbm %s755_s0, 4864  ;;  %p444_p4 = scmp.lt.u32.totalorder %s611_s24, %s755_s0 }
  0x17   : > { %p441_p2 = pnand %p440_p1, %p439_p0  ;;  %p445_p5 = scmp.lt.u32.totalorder %s443_s3, %s438_s29 }
  0x18   : > { %p447_p8 = scmp.lt.u32.totalorder %s438_s29, %s611_s24 }
  0x19   : > { %p442_p3 = pneg %p441_p2  ;;  %p446_p7 = por %p445_p5, %p444_p4 }
  0x1b   : > { %p448_p10 = por %p447_p8, %p446_p7 }
  0x1d   : > { %p449_p9 = pnand %p448_p10, %p442_p3 }
  0x1f   : > { %452 = shalt.err (!%p449_p9)
}
  0x20   : > { %s453_s11 = scalar_lea.vmem %s617_s27, 2432  ;;  %s536_s13 = smov [#allocation2]  }
  0x21   : > { %p454_p0 = scmp.ne.s32.totalorder %s617_s27, %s453_s11  ;;  %s458_s14 = sshll.u32 %s536_s13, 4  ;;  %s459_s14 = int_to_ptr.vmem [resolvable:$false] %s458_s14 }
  0x22   : > { %s460_s19 = scalar_lea.vmem %s459_s14, 4864  ;;  %p461_p11 = scmp.lt.s32.totalorder %s617_s27, %s459_s14 }
  0x23   : > { %p456_p2 = pnand %p454_p0, %p440_p1  ;;  %p462_p4 = scmp.lt.s32.totalorder %s460_s19, %s453_s11 }
  0x25   : > { %p457_p12 = pneg %p456_p2  ;;  %p463_p5 = por %p462_p4, %p461_p11 }
  0x27   : > { %p464_p7 = pnand %p463_p5, %p457_p12 }
  0x29   : > { %467 = shalt.err (!%p464_p7)
}
  0x2a   : > { %s537_s20 = smov 128   ;;  %s538_s21 = smov 8  }
  0x2b   : > { %357 = dma.hbm_to_vmem [thread:$0]  (!%p613_p13), %s611_s24, 2432, %s617_s27, %s619_s28, %s537_s20, %s537_s20, %s538_s21  }
  0x2c   : > { %p342_p9 = scmp.ge.s32.totalorder %s534_s9, 1  ;;  %p106_p1 = scmp.lt.s32.totalorder %s534_s9, 3 }
  0x2e   : > { %p107_p3 = pnand %p342_p9, %p106_p1 }
  0x2f   : > { %s650_s22 = sand.u32 (!%p107_p3), 1, %s526_s7  }
  0x30   : > { %110 = sbr.rel (%p107_p3) target bundleno = 107 (0x6b), region = 24  ;;  %s113_s26 = scalar_lea.sflag (!%p107_p3), [#allocation3], %s650_s22 }
  0x31   : > { %s349_s23 = smul.u32 (!%p107_p3), 152, %s650_s22 }
  0x33   : > { %s656_s29 = scalar_lea.vmem (!%p107_p3), [#allocation2], %s349_s23 }
  0x37   : > { %513 = dma.done.wait (%p591_p6), %s113_s26, 2432  }
  0x38   : > { %515 = vsyncadd (%p591_p6), %s113_s26, 4294964864  ;;  %v137_v0 = vld [vmem:[%s656_s29] sm:$0xff]  ;;  %v138_v1 = vld [vmem:[%s656_s29 + $0x8] sm:$0xff]  ;;  %s683_s16 = scalar_lea.vmem [#allocation5], %s349_s23  ;;  %s347_s24 = smul.u32 2432, %s573_s10 }
  0x39   : > { %v139_v2 = vld [vmem:[%s656_s29 + $0x10] sm:$0xff]  ;;  %v156_v3 = vmul.f32 0.5, %v137_v0  ;;  %v157_v4 = vmul.f32 0.5, %v138_v1  ;;  %v140_v6 = vld [vmem:[%s656_s29 + $0x18] sm:$0xff]  ;;  %v141_v7 = vld [vmem:[%s656_s29 + $0x20] sm:$0xff]  ;;  %s265_s25 = sshll.u32 %s683_s16, 4  ;;  %s703_s25 = int_to_ptr.vmem [resolvable:$true] %s265_s25 }
  0x3a   : > { %v158_v5 = vmul.f32 0.5, %v139_v2  ;;  %v142_v8 = vld [vmem:[%s656_s29 + $0x28] sm:$0xff]  ;;  %v159_v9 = vmul.f32 0.5, %v140_v6  ;;  %v143_v10 = vld [vmem:[%s656_s29 + $0x30] sm:$0xff]  ;;  %v160_v11 = vmul.f32 0.5, %v141_v7  ;;  %v144_v12 = vld [vmem:[%s656_s29 + $0x38] sm:$0xff]  ;;  %s709_s28 = scalar_lea.hbm %s756_s1, %s347_s24 }
  0x3b   : > { %400 = vtanh.f32 %v156_v3  ;;  %v161_v13 = vmul.f32 0.5, %v142_v8  ;;  %v145_v14 = vld [vmem:[%s656_s29 + $0x40] sm:$0xff]  ;;  %v162_v15 = vmul.f32 0.5, %v143_v10  ;;  %v146_v16 = vld [vmem:[%s656_s29 + $0x48] sm:$0xff]  ;;  %v163_v17 = vmul.f32 0.5, %v144_v12  ;;  %v147_v18 = vld [vmem:[%s656_s29 + $0x50] sm:$0xff] }
  0x3c   : > { %402 = vtanh.f32 %v157_v4  ;;  %v164_v19 = vmul.f32 0.5, %v145_v14  ;;  %v148_v20 = vld [vmem:[%s656_s29 + $0x58] sm:$0xff]  ;;  %v165_v21 = vmul.f32 0.5, %v146_v16  ;;  %v149_v22 = vld [vmem:[%s656_s29 + $0x60] sm:$0xff]  ;;  %v166_v23 = vmul.f32 0.5, %v147_v18  ;;  %v150_v24 = vld [vmem:[%s656_s29 + $0x68] sm:$0xff] }
  0x3d   : > { %404 = vtanh.f32 %v158_v5  ;;  %v167_v25 = vmul.f32 0.5, %v148_v20  ;;  %v151_v26 = vld [vmem:[%s656_s29 + $0x70] sm:$0xff]  ;;  %v168_v27 = vmul.f32 0.5, %v149_v22  ;;  %v152_v28 = vld [vmem:[%s656_s29 + $0x78] sm:$0xff]  ;;  %v169_v29 = vmul.f32 0.5, %v150_v24  ;;  %v153_v30 = vld [vmem:[%s656_s29 + $0x80] sm:$0xff] }
  0x3e   : > { %406 = vtanh.f32 %v159_v9  ;;  %v170_v32 = vmul.f32 0.5, %v151_v26  ;;  %v154_v33 = vld [vmem:[%s656_s29 + $0x88] sm:$0xff]  ;;  %v171_v36 = vmul.f32 0.5, %v152_v28  ;;  %v155_v37 = vld [vmem:[%s656_s29 + $0x90] sm:$0xff]  ;;  %v172_v40 = vmul.f32 0.5, %v153_v30  ;;  %s252_s30 = scalar_lea.sflag [#allocation4], %s650_s22 }
  0x3f   : > { %408 = vtanh.f32 %v160_v11  ;;  %v173_v44 = vmul.f32 0.5, %v154_v33  ;;  %v174_v48 = vmul.f32 0.5, %v155_v37  ;;  %s468_s2 = scalar_lea.vmem %s703_s25, 2432  ;;  %p762_p11 = scmp.ne.s32.totalorder %s759_s17, 0 }
  0x40   : > { %410 = vtanh.f32 %v161_v13  ;;  %p469_p6 = scmp.ne.s32.totalorder %s703_s25, %s468_s2  ;;  %s539_s3 = smov [#allocation5]  }
  0x41   : > { %412 = vtanh.f32 %v162_v15  ;;  %s472_s4 = sshll.u32 %s539_s3, 4  ;;  %s473_s4 = int_to_ptr.vmem [resolvable:$false] %s472_s4 }
  0x42   : > { %414 = vtanh.f32 %v163_v17  ;;  %p470_p12 = pnand %p469_p6, %p762_p11  ;;  %s474_s5 = scalar_lea.vmem %s473_s4, 4864 }
  0x43   : > { %416 = vtanh.f32 %v164_v19  ;;  %p475_p8 = scmp.lt.s32.totalorder %s703_s25, %s473_s4  ;;  %p476_p10 = scmp.lt.s32.totalorder %s474_s5, %s468_s2 }
  0x44   : > { %418 = vtanh.f32 %v165_v21  ;;  %p471_p13 = pneg %p470_p12 }
  0x45   : > { %v401_v31 = vpop.eup %400  ;;  %420 = vtanh.f32 %v166_v23  ;;  %p477_p0 = por %p476_p10, %p475_p8 }
  0x46   : > { %v403_v34 = vpop.eup %402  ;;  %v194_v35 = vmul.f32 0.5, %v401_v31  ;;  %422 = vtanh.f32 %v167_v25 }
  0x47   : > { %v405_v38 = vpop.eup %404  ;;  %v195_v39 = vmul.f32 0.5, %v403_v34  ;;  %424 = vtanh.f32 %v168_v27  ;;  %p478_p2 = pnand %p477_p0, %p471_p13 }
  0x48   : > { %v407_v41 = vpop.eup %406  ;;  %v213_v42 = vadd.f32 0.5, %v194_v35  ;;  %v196_v43 = vmul.f32 0.5, %v405_v38  ;;  %426 = vtanh.f32 %v169_v29 }
  0x49   : > { %v409_v45 = vpop.eup %408  ;;  %v214_v46 = vadd.f32 0.5, %v195_v39  ;;  %v197_v47 = vmul.f32 0.5, %v407_v41  ;;  %428 = vtanh.f32 %v170_v32 }
  0x4a   : > { %v411_v49 = vpop.eup %410  ;;  %232 = vst [vmem:[%s683_s16] sm:$0xff] %v213_v42  ;;  %v215_v50 = vadd.f32 0.5, %v196_v43  ;;  %v198_v51 = vmul.f32 0.5, %v409_v45  ;;  %430 = vtanh.f32 %v171_v36 }
  0x4b   : > { %v413_v52 = vpop.eup %412  ;;  %233 = vst [vmem:[%s683_s16 + $0x8] sm:$0xff] %v214_v46  ;;  %v216_v53 = vadd.f32 0.5, %v197_v47  ;;  %v199_v54 = vmul.f32 0.5, %v411_v49  ;;  %432 = vtanh.f32 %v172_v40 }
  0x4c   : > { %v415_v55 = vpop.eup %414  ;;  %234 = vst [vmem:[%s683_s16 + $0x10] sm:$0xff] %v215_v50  ;;  %v217_v56 = vadd.f32 0.5, %v198_v51  ;;  %v200_v57 = vmul.f32 0.5, %v413_v52  ;;  %434 = vtanh.f32 %v173_v44 }
  0x4d   : > { %v417_v58 = vpop.eup %416  ;;  %235 = vst [vmem:[%s683_s16 + $0x18] sm:$0xff] %v216_v53  ;;  %v218_v59 = vadd.f32 0.5, %v199_v54  ;;  %v201_v60 = vmul.f32 0.5, %v415_v55  ;;  %436 = vtanh.f32 %v174_v48 }
  0x4e   : > { %v419_v61 = vpop.eup %418  ;;  %236 = vst [vmem:[%s683_s16 + $0x20] sm:$0xff] %v217_v56  ;;  %v219_v62 = vadd.f32 0.5, %v200_v57  ;;  %v202_v63 = vmul.f32 0.5, %v417_v58 }
  0x4f   : > { %v421_v0 = vpop.eup %420  ;;  %237 = vst [vmem:[%s683_s16 + $0x28] sm:$0xff] %v218_v59  ;;  %v220_v1 = vadd.f32 0.5, %v201_v60  ;;  %v203_v2 = vmul.f32 0.5, %v419_v61 }
  0x50   : > { %v423_v3 = vpop.eup %422  ;;  %238 = vst [vmem:[%s683_s16 + $0x30] sm:$0xff] %v219_v62  ;;  %v221_v4 = vadd.f32 0.5, %v202_v63  ;;  %v204_v5 = vmul.f32 0.5, %v421_v0 }
  0x51   : > { %v425_v6 = vpop.eup %424  ;;  %239 = vst [vmem:[%s683_s16 + $0x38] sm:$0xff] %v220_v1  ;;  %v222_v7 = vadd.f32 0.5, %v203_v2  ;;  %v205_v8 = vmul.f32 0.5, %v423_v3 }
  0x52   : > { %v427_v9 = vpop.eup %426  ;;  %240 = vst [vmem:[%s683_s16 + $0x40] sm:$0xff] %v221_v4  ;;  %v223_v10 = vadd.f32 0.5, %v204_v5  ;;  %v206_v11 = vmul.f32 0.5, %v425_v6 }
  0x53   : > { %v429_v12 = vpop.eup %428  ;;  %241 = vst [vmem:[%s683_s16 + $0x48] sm:$0xff] %v222_v7  ;;  %v224_v13 = vadd.f32 0.5, %v205_v8  ;;  %v207_v14 = vmul.f32 0.5, %v427_v9 }
  0x54   : > { %v431_v15 = vpop.eup %430  ;;  %242 = vst [vmem:[%s683_s16 + $0x50] sm:$0xff] %v223_v10  ;;  %v225_v16 = vadd.f32 0.5, %v206_v11  ;;  %v208_v17 = vmul.f32 0.5, %v429_v12 }
  0x55   : > { %v433_v18 = vpop.eup %432  ;;  %243 = vst [vmem:[%s683_s16 + $0x58] sm:$0xff] %v224_v13  ;;  %v226_v19 = vadd.f32 0.5, %v207_v14  ;;  %v209_v20 = vmul.f32 0.5, %v431_v15 }
  0x56   : > { %v435_v21 = vpop.eup %434  ;;  %244 = vst [vmem:[%s683_s16 + $0x60] sm:$0xff] %v225_v16  ;;  %v227_v22 = vadd.f32 0.5, %v208_v17  ;;  %v210_v23 = vmul.f32 0.5, %v433_v18 }
  0x57   : > { %v437_v24 = vpop.eup %436  ;;  %245 = vst [vmem:[%s683_s16 + $0x68] sm:$0xff] %v226_v19  ;;  %v228_v25 = vadd.f32 0.5, %v209_v20  ;;  %v211_v26 = vmul.f32 0.5, %v435_v21 }
  0x58   : > { %246 = vst [vmem:[%s683_s16 + $0x70] sm:$0xff] %v227_v22  ;;  %v229_v27 = vadd.f32 0.5, %v210_v23  ;;  %v212_v28 = vmul.f32 0.5, %v437_v24 }
  0x59   : > { %247 = vst [vmem:[%s683_s16 + $0x78] sm:$0xff] %v228_v25  ;;  %v230_v29 = vadd.f32 0.5, %v211_v26 }
  0x5a   : > { %248 = vst [vmem:[%s683_s16 + $0x80] sm:$0xff] %v229_v27  ;;  %v231_v30 = vadd.f32 0.5, %v212_v28 }
  0x5b   : > { %249 = vst [vmem:[%s683_s16 + $0x88] sm:$0xff] %v230_v29 }
  0x5c   : > { %250 = vst [vmem:[%s683_s16 + $0x90] sm:$0xff] %v231_v30 }
  0x5d   : > { %481 = shalt.err (!%p478_p2)
}
  0x5e   : > { %s482_s11 = scalar_lea.hbm %s709_s28, 2432  ;;  %s486_s19 = scalar_lea.hbm %s756_s1, 4864 }
  0x5f   : > { %p483_p4 = scmp.ne.s32.totalorder %s709_s28, %s482_s11  ;;  %p487_p9 = scmp.lt.u32.totalorder %s709_s28, %s756_s1 }
  0x60   : > { %p488_p1 = scmp.lt.u32.totalorder %s486_s19, %s482_s11  ;;  %p490_p6 = scmp.lt.u32.totalorder %s482_s11, %s709_s28 }
  0x61   : > { %p484_p5 = pnand %p483_p4, %p762_p11 }
  0x62   : > { %p489_p3 = por %p488_p1, %p487_p9 }
  0x63   : > { %p485_p7 = pneg %p484_p5 }
  0x64   : > { %p491_p12 = por %p490_p6, %p489_p3 }
  0x66   : > { %p492_p13 = pnand %p491_p12, %p485_p7 }
  0x68   : > { %495 = shalt.err (!%p492_p13)
}
  0x69   : > { %s540_s23 = smov 128   ;;  %s541_s26 = smov 8  }
  0x6a   : > { %352 = dma.vmem_to_hbm [thread:$0]  (%p762_p11), %s703_s25, 2432, %s709_s28, %s252_s30, %s540_s23, %s540_s23, %s541_s26  }
  0x6b PF: > { %s280_s29 = sand.u32 1, %s522_s6   ;;  %p763_p8 = scmp.ne.s32.totalorder %s760_s18, 0 }
  0x6c   : > { %p764_p10 = scmp.ge.s32.totalorder %s534_s9, 2  ;;  %s281_s16 = scalar_lea.sflag [#allocation4], %s280_s29 }
  0x6e   : > { %p359_p0 = pnand %p764_p10, %p763_p8 }
  0x70   : > { %517 = dma.done.wait (!%p359_p0), %s281_s16, 2432  }
  0x71   : > { %519 = vsyncadd (!%p359_p0), %s281_s16, 4294964864  ;;  %p14_p2 = scmp.ge.s32.totalorder %s577_s12, 4   ;;  %s765_s6 = smov %s526_s7 }
  0x72   : > { %s766_s7 = smov %s530_s8  ;;  %s767_s8 = smov %s589_s15 }
  0x73   : > { %s768_s9 = smov %s577_s12  ;;  %16 = sbr.rel (!%p14_p2) target bundleno = 5 (0x5), region = 69 }
  0x7a   :  { %286 = vsyncpa [#allocation3], 1 }
  0x7b   :  { %288 = vsyncpa [#allocation3 + $0x1], 1 }
  0x7c   :  { %289 = vsyncpa [#allocation4], 1 }
  0x7d   :  { %291 = vsyncpa [#allocation4 + $0x1], 1 }

</bundles_post_ra>
